<compile_context>
chip_gen: v6e
topology: v6e:2x2x1
jax: 0.10.0
libtpu: 0.0.40
codegen_flags: <defaults>
</compile_context>

<pallas_src>
import functools

import jax
import jax.numpy as jnp
from jax.experimental import pallas as pl
from jax.experimental.pallas import tpu as pltpu

THRESH = 0.5                     # BatchNorm3d1 weight init
EPS = 1e-5
_MiB = 1024 * 1024

_PARALLEL = getattr(pltpu, "PARALLEL", "parallel")
_ARBITRARY = getattr(pltpu, "ARBITRARY", "arbitrary")
_CORE_PARALLEL = getattr(pltpu, "CORE_PARALLEL", _PARALLEL)


# --------------------------------------------------------------------------
# Hardware probing (safe fallbacks; only used to pick budgets / core split).
# --------------------------------------------------------------------------
def _physical_vmem_bytes():
    try:
        v = int(pltpu.get_tpu_info().vmem_capacity_bytes)
        if v > 0:
            return v
    except Exception:
        pass
    return 64 * _MiB          # conservative (v7x-sized) fallback


def _num_tensorcores():
    try:
        kind = jax.devices()[0].device_kind.lower()
    except Exception:
        return 1
    return 2 if ("v7" in kind or "7x" in kind) else 1


# --------------------------------------------------------------------------
# Tile planning: (tile_b, tile_l) blocks of the (B, C*HW) view.
#   tile_b : multiple of the sublane packing (8 f32 / 16 bf16) or == B
#   tile_l : multiple of 128 or == C*HW  (lane-dense)
# --------------------------------------------------------------------------
def _plan_tiles(B, CHW, itemsize, budget_bytes):
    row_align = max(8, 32 // max(1, itemsize))
    row_bytes = CHW * itemsize
    rows = budget_bytes // max(1, row_bytes)
    if rows >= B:
        return B, CHW
    if rows >= row_align:
        return (rows // row_align) * row_align, CHW
    # A single row_align-row block exceeds the budget: tile the lane axis too.
    tile_b = min(B, row_align)
    lanes = budget_bytes // max(1, tile_b * itemsize)
    tile_l = (lanes // 128) * 128
    if tile_l <= 0:
        tile_l = min(CHW, 128)
    return tile_b, min(tile_l, CHW)


# --------------------------------------------------------------------------
# Pass 1: per-lane partial sums / sums-of-squares (resident accumulators).
# --------------------------------------------------------------------------
def _stats_kernel(x_ref, sum_ref, sq_ref, *, total_rows, tiles_per_split,
                  mask_rows):
    k = pl.program_id(2)                       # reduction (batch-tile) axis

    @pl.when(k == 0)
    def _init():
        sum_ref[...] = jnp.zeros_like(sum_ref)
        sq_ref[...] = jnp.zeros_like(sq_ref)

    x = x_ref[...].astype(jnp.float32)         # (tile_b, tile_l)
    if mask_rows:
        tile_b = x_ref.shape[0]
        row_tile = pl.program_id(0) * tiles_per_split + k
        valid = total_rows - row_tile * tile_b
        row_ids = jax.lax.broadcasted_iota(jnp.int32, x.shape, 0)
        x = jnp.where(row_ids < valid, x, 0.0)

    # Reduction over the leading (sublane) axis only: VPU adds, no hot-loop
    # cross-lane work.  Cross-lane reduce happens in the tiny JAX epilogue.
    sum_ref[...] += jnp.sum(x, axis=0)[None, None, :]
    sq_ref[...] += jnp.sum(x * x, axis=0)[None, None, :]


# --------------------------------------------------------------------------
# Pass 2: y = x * scale + shift   (scale/shift are per-lane vectors).
# --------------------------------------------------------------------------
def _normalize_kernel(x_ref, scale_ref, shift_ref, o_ref):
    x = x_ref[...].astype(jnp.float32)                    # (tile_b, tile_l)
    o_ref[...] = (x * scale_ref[...] + shift_ref[...]).astype(o_ref.dtype)


# --------------------------------------------------------------------------
# Wrapper: forward of `batch_norm_2d` (training-mode batch statistics).
# --------------------------------------------------------------------------
def batch_norm_2d_tdbn(x, weight, bias, *, eps=EPS,
                       pass1_block_bytes=None, pass2_block_bytes=None,
                       vmem_limit_bytes=None, num_tensorcores=None):
    """x: (T, N, C, H, W);  weight, bias: (C,)."""
    T, N, C, H, W = x.shape
    B = T * N
    HW = H * W
    CHW = C * HW

    # Free reshape (row-major collapse), no HBM transpose traffic.
    x3 = x.reshape(B, CHW)
    itemsize = jnp.dtype(x.dtype).itemsize

    phys_vmem = _physical_vmem_bytes()
    if vmem_limit_bytes is None:
        vmem_limit_bytes = (phys_vmem * 3) // 4          # 48 MiB v7x / 96 MiB v5e,v6e
    if pass1_block_bytes is None:                        # input-only stream
        pass1_block_bytes = max(_MiB, min(32 * _MiB, vmem_limit_bytes // 3))
    if pass2_block_bytes is None:                        # in + out double-buffered
        pass2_block_bytes = max(_MiB, min(16 * _MiB, vmem_limit_bytes // 4 - _MiB))
    if num_tensorcores is None:
        num_tensorcores = _num_tensorcores()

    # ------------------- Pass 1: partial statistics ------------------------
    tb1, tl1 = _plan_tiles(B, CHW, itemsize, pass1_block_bytes)
    nb1 = pl.cdiv(B, tb1)
    nl1 = pl.cdiv(CHW, tl1)
    nsplit1 = 2 if (num_tensorcores == 2 and nb1 >= 2 and nb1 % 2 == 0) else 1
    tps1 = nb1 // nsplit1
    sem1 = (_CORE_PARALLEL if nsplit1 == 2 else _ARBITRARY,
            _ARBITRARY, _ARBITRARY)

    stats_kernel = functools.partial(
        _stats_kernel, total_rows=B, tiles_per_split=tps1,
        mask_rows=(B % tb1 != 0))

    partial_sum, partial_sq = pl.pallas_call(
        stats_kernel,
        out_shape=(jax.ShapeDtypeStruct((nsplit1, 1, CHW), jnp.float32),
                   jax.ShapeDtypeStruct((nsplit1, 1, CHW), jnp.float32)),
        grid=(nsplit1, nl1, tps1),
        in_specs=[pl.BlockSpec((tb1, tl1),
                               lambda s, l, k, tps=tps1: (s * tps + k, l))],
        out_specs=(pl.BlockSpec((1, 1, tl1), lambda s, l, k: (s, 0, l)),
                   pl.BlockSpec((1, 1, tl1), lambda s, l, k: (s, 0, l))),
        compiler_params=pltpu.CompilerParams(
            dimension_semantics=sem1,
            vmem_limit_bytes=vmem_limit_bytes),
    )(x3)

    # ------ Tiny plain-JAX epilogue: Chan combine + affine fold ------------
    count_total = float(B * HW)                     # per-channel sample count
    rows_per_split = tps1 * tb1
    counts = jnp.clip(
        B - jnp.arange(nsplit1, dtype=jnp.float32) * rows_per_split,
        1.0, float(rows_per_split)).reshape(nsplit1, 1, 1)

    s_slab = partial_sum.reshape(nsplit1, C, HW)    # per (split, c, spatial) sums
    q_slab = partial_sq.reshape(nsplit1, C, HW)
    m_loc = s_slab / counts                         # local means
    m2_loc = q_slab - counts * m_loc * m_loc        # local M2 (few samples each)
    mean = s_slab.sum(axis=(0, 2)) / count_total    # (C,)
    m2 = m2_loc.sum(axis=(0, 2)) + \
        (counts * (m_loc - mean[None, :, None]) ** 2).sum(axis=(0, 2))
    var = jnp.maximum(m2 / count_total, 0.0)        # biased variance
    inv = jax.lax.rsqrt(var + eps)
    scale = weight.astype(jnp.float32) * inv        # (C,)
    shift = bias.astype(jnp.float32) - mean * scale
    scale_vec = jnp.repeat(scale, HW, axis=0).reshape(1, CHW)
    shift_vec = jnp.repeat(shift, HW, axis=0).reshape(1, CHW)
    # TODO(synk): for tiny tensors the epilogue could be folded into pass 2
    # under pl.when(step == 0) to save two op launches; skipped (few-us win).

    # ------------------- Pass 2: elementwise FMA ---------------------------
    tb2, tl2 = _plan_tiles(B, CHW, itemsize, pass2_block_bytes)
    nb2 = pl.cdiv(B, tb2)
    nl2 = pl.cdiv(CHW, tl2)
    nsplit2 = 2 if (num_tensorcores == 2 and nb2 >= 2 and nb2 % 2 == 0) else 1
    tps2 = nb2 // nsplit2
    sem2 = (_CORE_PARALLEL if nsplit2 == 2 else _PARALLEL,
            _PARALLEL, _PARALLEL)

    y3 = pl.pallas_call(
        _normalize_kernel,
        out_shape=jax.ShapeDtypeStruct((B, CHW), x.dtype),
        grid=(nsplit2, tps2, nl2),
        in_specs=[
            pl.BlockSpec((tb2, tl2), lambda s, i, l, tps=tps2: (s * tps + i, l)),
            pl.BlockSpec((1, tl2), lambda s, i, l: (0, l)),
            pl.BlockSpec((1, tl2), lambda s, i, l: (0, l)),
        ],
        out_specs=pl.BlockSpec((tb2, tl2),
                               lambda s, i, l, tps=tps2: (s * tps + i, l)),
        compiler_params=pltpu.CompilerParams(
            dimension_semantics=sem2,
            vmem_limit_bytes=vmem_limit_bytes),
    )(x3, scale_vec, shift_vec)

    # Free reshape back.
    return y3.reshape(T, N, C, H, W)


# --------------------------------------------------------------------------
# Self-test
# --------------------------------------------------------------------------
def _reference(x, weight, bias, eps=EPS):
    C = x.shape[2]
    mean = x.mean(axis=(0, 1, 3, 4), keepdims=True)
    var = ((x - mean) ** 2).mean(axis=(0, 1, 3, 4), keepdims=True)
    return (x - mean) / jnp.sqrt(var + eps) * weight.reshape(1, 1, C, 1, 1) \
        + bias.reshape(1, 1, C, 1, 1)


if __name__ == "__main__":
    key = jax.random.PRNGKey(0)

    # Deterministic parameter init matching BatchNorm3d1.reset_parameters():
    #   weight = thresh (0.5), bias = 0.
    C = 8
    weight = jnp.full((C,), THRESH, dtype=jnp.float32)
    bias = jnp.zeros((C,), dtype=jnp.float32)

    # Run 1: default config (large blocks, single tile). (T, N, C, H, W)
    x1 = jax.random.normal(key, (4, 2, C, 16, 16), dtype=jnp.float32) * 2.0 + 1.0
    y1 = jax.block_until_ready(batch_norm_2d_tdbn(x1, weight, bias))
    assert y1.shape == x1.shape
    assert jnp.allclose(y1, _reference(x1, weight, bias), atol=1e-4, rtol=1e-4), \
        "mismatch (default tiles)"

    # Run 2: odd B=15 -> ragged last row tile + multi-tile accumulation.
    x2 = jax.random.normal(jax.random.PRNGKey(1), (5, 3, C, 16, 16),
                           dtype=jnp.float32) * 0.5 - 3.0
    y2 = jax.block_until_ready(
        batch_norm_2d_tdbn(x2, weight, bias,
                           pass1_block_bytes=8 * C * 16 * 16 * 4,
                           pass2_block_bytes=8 * C * 16 * 16 * 4))
    assert jnp.allclose(y2, _reference(x2, weight, bias), atol=1e-4, rtol=1e-4), \
        "mismatch (ragged rows)"

    # Run 3: tiny budget -> lane-axis tiling (tile_l=768) with ragged lane and
    # row tiles; exercises the big-C*HW code path.
    y3 = jax.block_until_ready(
        batch_norm_2d_tdbn(x2, weight, bias,
                           pass1_block_bytes=25600,
                           pass2_block_bytes=25600))
    assert jnp.allclose(y3, _reference(x2, weight, bias), atol=1e-4, rtol=1e-4), \
        "mismatch (lane tiling)"

    print("KERNEL_OK")
</pallas_src>

<mosaic_0001>
module attributes {stable_mosaic.version = 11 : i64} {
  func.func @_stats_kernel(%arg0: i32, %arg1: i32, %arg2: i32, %arg3: memref<8x2048xf32, #tpu.memory_space<vmem>>, %arg4: memref<1x1x2048xf32, #tpu.memory_space<vmem>>, %arg5: memref<1x1x2048xf32, #tpu.memory_space<vmem>>) attributes {dimension_semantics = [#tpu.dimension_semantics<arbitrary>, #tpu.dimension_semantics<arbitrary>, #tpu.dimension_semantics<arbitrary>], iteration_bounds = array<i64: 1, 1, 1>, scalar_prefetch = 0 : i64, scratch_operands = 0 : i64, tpu.core_type = #tpu.core_type<tc>, window_params = [{transform_indices = @transform_0, window_bounds = array<i64: 8, 2048>}, {transform_indices = @transform_1, window_bounds = array<i64: 1, 1, 2048>}, {transform_indices = @transform_2, window_bounds = array<i64: 1, 1, 2048>}]} {
    %c0_i32 = arith.constant 0 : i32
    %0 = arith.cmpi eq, %arg2, %c0_i32 : i32
    %1 = arith.extui %0 : i1 to i32
    %c0_i32_0 = arith.constant 0 : i32
    %2 = arith.cmpi ne, %1, %c0_i32_0 : i32
    scf.if %2 {
      %cst_15 = arith.constant 0.000000e+00 : f32
      %15 = vector.broadcast %cst_15 : f32 to vector<1x1x2048xf32>
      %c0_16 = arith.constant 0 : index
      %c0_17 = arith.constant 0 : index
      %c0_18 = arith.constant 0 : index
      %16 = vector.load %arg4[%c0_16, %c0_17, %c0_18] : memref<1x1x2048xf32, #tpu.memory_space<vmem>>, vector<1x1x2048xf32>
      tpu.vector_store %arg4[%c0_16, %c0_17, %c0_18], %15 {strides = array<i32>} : memref<1x1x2048xf32, #tpu.memory_space<vmem>>, vector<1x1x2048xf32>,
      %cst_19 = arith.constant 0.000000e+00 : f32
      %17 = vector.broadcast %cst_19 : f32 to vector<1x1x2048xf32>
      %c0_20 = arith.constant 0 : index
      %c0_21 = arith.constant 0 : index
      %c0_22 = arith.constant 0 : index
      %18 = vector.load %arg5[%c0_20, %c0_21, %c0_22] : memref<1x1x2048xf32, #tpu.memory_space<vmem>>, vector<1x1x2048xf32>
      tpu.vector_store %arg5[%c0_20, %c0_21, %c0_22], %17 {strides = array<i32>} : memref<1x1x2048xf32, #tpu.memory_space<vmem>>, vector<1x1x2048xf32>,
    } else {
    }
    %c0 = arith.constant 0 : index
    %c0_1 = arith.constant 0 : index
    %3 = vector.load %arg3[%c0, %c0_1] : memref<8x2048xf32, #tpu.memory_space<vmem>>, vector<8x2048xf32>
    %c0_2 = arith.constant 0 : index
    %c0_3 = arith.constant 0 : index
    %c0_4 = arith.constant 0 : index
    %4 = vector.load %arg4[%c0_2, %c0_3, %c0_4] : memref<1x1x2048xf32, #tpu.memory_space<vmem>>, vector<1x1x2048xf32>
    %cst = arith.constant dense<0.000000e+00> : vector<2048xf32>
    %5 = vector.multi_reduction <add>, %3, %cst [0] : vector<8x2048xf32> to vector<2048xf32>
    %6 = vector.shape_cast %5 : vector<2048xf32> to vector<1x1x2048xf32>
    %7 = arith.addf %4, %6 : vector<1x1x2048xf32>
    %c0_5 = arith.constant 0 : index
    %c0_6 = arith.constant 0 : index
    %c0_7 = arith.constant 0 : index
    %8 = vector.load %arg4[%c0_5, %c0_6, %c0_7] : memref<1x1x2048xf32, #tpu.memory_space<vmem>>, vector<1x1x2048xf32>
    tpu.vector_store %arg4[%c0_5, %c0_6, %c0_7], %7 {strides = array<i32>} : memref<1x1x2048xf32, #tpu.memory_space<vmem>>, vector<1x1x2048xf32>,
    %c0_8 = arith.constant 0 : index
    %c0_9 = arith.constant 0 : index
    %c0_10 = arith.constant 0 : index
    %9 = vector.load %arg5[%c0_8, %c0_9, %c0_10] : memref<1x1x2048xf32, #tpu.memory_space<vmem>>, vector<1x1x2048xf32>
    %10 = arith.mulf %3, %3 : vector<8x2048xf32>
    %cst_11 = arith.constant dense<0.000000e+00> : vector<2048xf32>
    %11 = vector.multi_reduction <add>, %10, %cst_11 [0] : vector<8x2048xf32> to vector<2048xf32>
    %12 = vector.shape_cast %11 : vector<2048xf32> to vector<1x1x2048xf32>
    %13 = arith.addf %9, %12 : vector<1x1x2048xf32>
    %c0_12 = arith.constant 0 : index
    %c0_13 = arith.constant 0 : index
    %c0_14 = arith.constant 0 : index
    %14 = vector.load %arg5[%c0_12, %c0_13, %c0_14] : memref<1x1x2048xf32, #tpu.memory_space<vmem>>, vector<1x1x2048xf32>
    tpu.vector_store %arg5[%c0_12, %c0_13, %c0_14], %13 {strides = array<i32>} : memref<1x1x2048xf32, #tpu.memory_space<vmem>>, vector<1x1x2048xf32>,
    return
  }
  func.func @transform_0(%arg0: i32, %arg1: i32, %arg2: i32) -> (i32, i32) {
    %c1_i32 = arith.constant 1 : i32
    %0 = arith.muli %arg0, %c1_i32 : i32
    %1 = arith.addi %0, %arg2 : i32
    %c0_i32 = arith.constant 0 : i32
    return %1, %arg1 : i32, i32
  }
  func.func @transform_1(%arg0: i32, %arg1: i32, %arg2: i32) -> (i32, i32, i32) {
    %c0_i32 = arith.constant 0 : i32
    %c0_i32_0 = arith.constant 0 : i32
    return %arg0, %c0_i32, %arg1 : i32, i32, i32
  }
  func.func @transform_2(%arg0: i32, %arg1: i32, %arg2: i32) -> (i32, i32, i32) {
    %c0_i32 = arith.constant 0 : i32
    %c0_i32_0 = arith.constant 0 : i32
    return %arg0, %c0_i32, %arg1 : i32, i32, i32
  }
}

</mosaic_0001>

<bundles_post_ra>
// kernel: tpu_custom_call.1
= control target key start
LH: loop header
LB: loop body
LE: loop exit
PB: predicated region body
PF: predicated region fallthrough
CT: control target
= control target key end

     0   :  { %8 = vsyncpa [#allocation3], 0  ;;  %s754_s0 = inlined_call_operand.hbm [shape: f32[8,2048], index: 0, kind: input, shape index: {}]   ;;  %s755_s1 = inlined_call_operand.hbm [shape: f32[1,1,2048], index: 1, kind: output, shape index: {0}]   ;;  %s756_s2 = inlined_call_operand.hbm [shape: f32[1,1,2048], index: 2, kind: output, shape index: {1}]  }
   0x1   :  { %9 = vsyncpa [#allocation4], 0 }
   0x2   :  { %10 = vsyncpa [#allocation7], 0  ;;  %s605_s9 = smov [#allocation2]  }
   0x3   :  { %s21_s10 = sshll.u32 %s605_s9, 4  ;;  %s22_s10 = int_to_ptr.vmem [resolvable:$true] %s21_s10 }
   0x4   :  { %s547_s11 = scalar_lea.vmem %s22_s10, 2048  ;;  %p552_p1 = scmp.lt.s32.totalorder %s22_s10, %s22_s10 }
   0x5   :  { %p548_p0 = scmp.ne.s32.totalorder %s22_s10, %s547_s11  ;;  %p553_p2 = scmp.lt.s32.totalorder %s547_s11, %s547_s11 }
   0x7   :  { %p554_p3 = por %p553_p2, %p552_p1 }
   0x9   :  { %p555_p4 = pnand %p554_p3, %p548_p0 }
   0xb   :  { %558 = shalt.err (!%p555_p4)
}
   0xc   :  { %24 = dma.hbm_to_vmem [thread:$0]  %s754_s0, 2048, %s22_s10, [#allocation3]  }
   0xd   :  { %599 = dma.done.wait [#allocation3], 2048  }
   0xe   :  { %600 = vsyncadd [#allocation3], 4294965248  ;;  %v174_v0 = vlaneseq  ;;  %v606_v1 = vmov 1966171168   ;;  %v37_v5 = vld [vmem:[#allocation2] sm:$0xff]  ;;  %v38_v6 = vld [vmem:[#allocation2 + $0x8] sm:$0xff] }
   0xf   :  { %v172_v2 = vunpack.c.l.s4 %v606_v1  ;;  %v627_v7 = vld [vmem:[#allocation2 + $0x10] sm:$0xff]  ;;  %v631_v9 = vld [vmem:[#allocation2 + $0x18] sm:$0xff]  ;;  %v633_v10 = vld [vmem:[#allocation2 + $0x20] sm:$0xff]  ;;  %v55_v12 = vrot.slane %v37_v5, 4  ;;  %v61_v13 = vrot.slane %v38_v6, 4  ;;  %v638_v15 = vmul.f32 %v37_v5, %v37_v5  ;;  %s607_s0 = smov [#allocation5]  }
  0x10   :  { %v175_v4 = vshrl.u32 %v174_v0, 7  ;;  %v635_v11 = vld [vmem:[#allocation2 + $0x28] sm:$0xff]  ;;  %v67_v14 = vrot.slane %v627_v7, 4  ;;  %v640_v16 = vld [vmem:[#allocation2 + $0x30] sm:$0xff]  ;;  %v73_v17 = vrot.slane %v631_v9, 4  ;;  %v79_v18 = vrot.slane %v633_v10, 4 }
  0x11   :  { %v173_v3 = vunpack.c.0.s8 %v172_v2  ;;  %v85_v19 = vrot.slane %v635_v11, 4  ;;  %v645_v20 = vmul.f32 %v38_v6, %v38_v6  ;;  %v647_v21 = vld [vmem:[#allocation2 + $0x38] sm:$0xff]  ;;  %v56_v22 = vadd.f32 %v55_v12, %v37_v5  ;;  %v657_v62 = vld [vmem:[#allocation2 + $0x40] sm:$0xff]  ;;  %v659_v63 = vld [vmem:[#allocation2 + $0x48] sm:$0xff]  ;;  %s511_s14 = sshll.u32 %s607_s0, 4  ;;  %s512_s14 = int_to_ptr.vmem [resolvable:$true] %s511_s14 }
  0x12   :  { %v62_v23 = vadd.f32 %v61_v13, %v38_v6  ;;  %v68_v24 = vadd.f32 %v67_v14, %v627_v7  ;;  %v91_v25 = vrot.slane %v640_v16, 4  ;;  %v74_v26 = vadd.f32 %v73_v17, %v631_v9  ;;  %v661_v2 = vld [vmem:[#allocation2 + $0x50] sm:$0xff]  ;;  %v665_v13 = vld [vmem:[#allocation2 + $0x58] sm:$0xff]  ;;  %s559_s15 = scalar_lea.vmem %s512_s14, 256  ;;  %p564_p6 = scmp.lt.s32.totalorder %s512_s14, %s512_s14 }
  0x13   :  { %v629_v8 = vsub.s32 %v173_v3, %v175_v4  ;;  %v80_v27 = vadd.f32 %v79_v18, %v633_v10  ;;  %v86_v28 = vadd.f32 %v85_v19, %v635_v11  ;;  %v97_v29 = vrot.slane %v647_v21, 4  ;;  %p560_p5 = scmp.ne.s32.totalorder %s512_s14, %s559_s15  ;;  %p565_p7 = scmp.lt.s32.totalorder %s559_s15, %s559_s15 }
  0x14   :  { %v57_v30 = vrot.slane %v56_v22, 2  ;;  %v63_v31 = vrot.slane %v62_v23, 2  ;;  %v69_v32 = vrot.slane %v68_v24, 2  ;;  %v92_v33 = vadd.f32 %v91_v25, %v640_v16 }
  0x15   :  { %v75_v34 = vrot.slane %v74_v26, 2  ;;  %v81_v35 = vrot.slane %v80_v27, 2  ;;  %v87_v36 = vrot.slane %v86_v28, 2  ;;  %v98_v37 = vadd.f32 %v97_v29, %v647_v21  ;;  %p566_p8 = por %p565_p7, %p564_p6 }
  0x16   :  { %v58_v38 = vadd.f32 %v57_v30, %v56_v22  ;;  %v64_v39 = vadd.f32 %v63_v31, %v62_v23  ;;  %v70_v40 = vadd.f32 %v69_v32, %v68_v24  ;;  %v93_v41 = vrot.slane %v92_v33, 2 }
  0x17   :  { %v76_v42 = vadd.f32 %v75_v34, %v74_v26  ;;  %v82_v43 = vadd.f32 %v81_v35, %v80_v27  ;;  %v88_v44 = vadd.f32 %v87_v36, %v86_v28  ;;  %v99_v45 = vrot.slane %v98_v37, 2  ;;  %v674_v26 = vld [vmem:[#allocation2 + $0x60] sm:$0xff]  ;;  %v677_v28 = vld [vmem:[#allocation2 + $0x68] sm:$0xff]  ;;  %p567_p9 = pnand %p566_p8, %p560_p5 }
  0x18   :  { %v59_v46 = vrot.slane %v58_v38, 1  ;;  %v65_v47 = vrot.slane %v64_v39, 1  ;;  %v71_v48 = vrot.slane %v70_v40, 1  ;;  %v94_v49 = vadd.f32 %v93_v41, %v92_v33 }
  0x19   :  { %v77_v50 = vrot.slane %v76_v42, 1  ;;  %v83_v51 = vrot.slane %v82_v43, 1  ;;  %v89_v52 = vrot.slane %v88_v44, 1  ;;  %v100_v53 = vadd.f32 %v99_v45, %v98_v37  ;;  %v686_v45 = vld [vmem:[#allocation2 + $0x70] sm:$0xff] }
  0x1a   :  { %v60_v54 = vadd.f32 %v59_v46, %v58_v38  ;;  %v66_v55 = vadd.f32 %v65_v47, %v64_v39  ;;  %v72_v56 = vadd.f32 %v71_v48, %v70_v40  ;;  %v95_v57 = vrot.slane %v94_v49, 1 }
  0x1b   :  { %v78_v58 = vadd.f32 %v77_v50, %v76_v42  ;;  %v84_v59 = vadd.f32 %v83_v51, %v82_v43  ;;  %v90_v60 = vadd.f32 %v89_v52, %v88_v44  ;;  %v101_v61 = vrot.slane %v100_v53, 1 }
  0x1c   :  { %v96_v0 = vadd.f32 %v95_v57, %v94_v49  ;;  %v167_v1 = vcombine.low %v60_v54, %v66_v55  ;;  %v103_v3 = vrot.slane %v657_v62, 4  ;;  %v109_v4 = vrot.slane %v659_v63, 4 }
  0x1d   :  { %v102_v5 = vadd.f32 %v101_v61, %v100_v53  ;;  %v168_v6 = vcombine.low %v72_v56, %v78_v58  ;;  %v169_v12 = vcombine.low %v84_v59, %v90_v60  ;;  %v115_v14 = vrot.slane %v661_v2, 4  ;;  %v690_v59 = vld [vmem:[#allocation2 + $0x78] sm:$0xff] }
  0x1e   :  { %v177_v17 = vrot.slane %v167_v1, %v629_v8  ;;  %v104_v18 = vadd.f32 %v103_v3, %v657_v62  ;;  %v110_v19 = vadd.f32 %v109_v4, %v659_v63  ;;  %v121_v22 = vrot.slane %v665_v13, 4 }
  0x1f   :  { %v170_v23 = vcombine.low %v96_v0, %v102_v5  ;;  %v184_v24 = vrot.slane %v168_v6, %v629_v8  ;;  %v191_v25 = vrot.slane %v169_v12, %v629_v8  ;;  %v116_v27 = vadd.f32 %v115_v14, %v661_v2 }
  0x20   :  { %v105_v29 = vrot.slane %v104_v18, 2  ;;  %v111_v30 = vrot.slane %v110_v19, 2  ;;  %v122_v31 = vadd.f32 %v121_v22, %v665_v13  ;;  %v127_v32 = vrot.slane %v674_v26, 4 }
  0x21   :  { %v198_v33 = vrot.slane %v170_v23, %v629_v8  ;;  %v199_v34 = vcombine.low %v177_v17, %v184_v24  ;;  %v117_v35 = vrot.slane %v116_v27, 2  ;;  %v133_v36 = vrot.slane %v677_v28, 4 }
  0x22   :  { %v106_v37 = vadd.f32 %v105_v29, %v104_v18  ;;  %v112_v38 = vadd.f32 %v111_v30, %v110_v19  ;;  %v123_v39 = vrot.slane %v122_v31, 2  ;;  %v128_v40 = vadd.f32 %v127_v32, %v674_v26 }
  0x23   :  { %v200_v41 = vcombine.low %v191_v25, %v198_v33  ;;  %v207_v42 = vrot.slane %v199_v34, %v629_v8  ;;  %v118_v43 = vadd.f32 %v117_v35, %v116_v27  ;;  %v134_v44 = vadd.f32 %v133_v36, %v677_v28 }
  0x24   :  { %v107_v46 = vrot.slane %v106_v37, 1  ;;  %v113_v47 = vrot.slane %v112_v38, 1  ;;  %v124_v48 = vadd.f32 %v123_v39, %v122_v31  ;;  %v129_v49 = vrot.slane %v128_v40, 2 }
  0x25   :  { %v214_v50 = vrot.slane %v200_v41, %v629_v8  ;;  %v119_v51 = vrot.slane %v118_v43, 1  ;;  %v135_v52 = vrot.slane %v134_v44, 2  ;;  %v139_v53 = vrot.slane %v686_v45, 4 }
  0x26   :  { %v108_v54 = vadd.f32 %v107_v46, %v106_v37  ;;  %v114_v55 = vadd.f32 %v113_v47, %v112_v38  ;;  %v125_v56 = vrot.slane %v124_v48, 1  ;;  %v130_v57 = vadd.f32 %v129_v49, %v128_v40 }
  0x27   :  { %v215_v58 = vcombine.low %v207_v42, %v214_v50  ;;  %v120_v60 = vadd.f32 %v119_v51, %v118_v43  ;;  %v136_v61 = vadd.f32 %v135_v52, %v134_v44  ;;  %v140_v0 = vadd.f32 %v139_v53, %v686_v45 }
  0x28   :  { %v126_v1 = vadd.f32 %v125_v56, %v124_v48  ;;  %v131_v3 = vrot.slane %v130_v57, 1  ;;  %v145_v4 = vrot.slane %v690_v59, 4  ;;  %v216_v5 = vcombine.low %v108_v54, %v114_v55 }
  0x29   :  { %v137_v6 = vrot.slane %v136_v61, 1  ;;  %v141_v12 = vrot.slane %v140_v0, 2  ;;  %v275_v14 = vmul.f32 %v627_v7, %v627_v7  ;;  %269 = vst [vmem:[#allocation5] sm:$0xff] %v215_v58  ;;  %v276_v25 = vmul.f32 %v631_v9, %v631_v9 }
  0x2a   :  { %v132_v17 = vadd.f32 %v131_v3, %v130_v57  ;;  %v146_v18 = vadd.f32 %v145_v4, %v690_v59  ;;  %v217_v19 = vcombine.low %v120_v60, %v126_v1  ;;  %v226_v22 = vrot.slane %v216_v5, %v629_v8 }
  0x2b   :  { %v138_v23 = vadd.f32 %v137_v6, %v136_v61  ;;  %v142_v24 = vadd.f32 %v141_v12, %v140_v0  ;;  %v277_v27 = vmul.f32 %v633_v10, %v633_v10  ;;  %v278_v7 = vmul.f32 %v635_v11, %v635_v11 }
  0x2c   :  { %v147_v29 = vrot.slane %v146_v18, 2  ;;  %v233_v30 = vrot.slane %v217_v19, %v629_v8  ;;  %v279_v31 = vmul.f32 %v640_v16, %v640_v16  ;;  %v280_v34 = vmul.f32 %v647_v21, %v647_v21 }
  0x2d   :  { %v143_v32 = vrot.slane %v142_v24, 1  ;;  %v218_v33 = vcombine.low %v132_v17, %v138_v23  ;;  %v289_v35 = vrot.slane %v638_v15, 4  ;;  %v295_v10 = vrot.slane %v645_v20, 4 }
  0x2e   :  { %v148_v9 = vadd.f32 %v147_v29, %v146_v18  ;;  %v248_v36 = vcombine.low %v226_v22, %v233_v30  ;;  %v301_v37 = vrot.slane %v275_v14, 4  ;;  %v307_v40 = vrot.slane %v276_v25, 4 }
  0x2f   :  { %v144_v38 = vadd.f32 %v143_v32, %v142_v24  ;;  %v240_v39 = vrot.slane %v218_v33, %v629_v8  ;;  %v290_v11 = vadd.f32 %v289_v35, %v638_v15  ;;  %v296_v42 = vadd.f32 %v295_v10, %v645_v20 }
  0x30   :  { %v149_v41 = vrot.slane %v148_v9, 1  ;;  %v714_v16 = vrot.slane %v248_v36, %v629_v8  ;;  %v302_v21 = vadd.f32 %v301_v37, %v275_v14  ;;  %v308_v44 = vadd.f32 %v307_v40, %v276_v25 }
  0x31   :  { %v291_v43 = vrot.slane %v290_v11, 2  ;;  %v313_v46 = vrot.slane %v277_v27, 4  ;;  %v319_v47 = vrot.slane %v278_v7, 4  ;;  %v297_v49 = vrot.slane %v296_v42, 2 }
  0x32   :  { %v150_v48 = vadd.f32 %v149_v41, %v148_v9  ;;  %v303_v50 = vrot.slane %v302_v21, 2  ;;  %v325_v51 = vrot.slane %v279_v31, 4  ;;  %v309_v53 = vrot.slane %v308_v44, 2 }
  0x33   :  { %v292_v52 = vadd.f32 %v291_v43, %v290_v11  ;;  %v314_v54 = vadd.f32 %v313_v46, %v277_v27  ;;  %v320_v15 = vadd.f32 %v319_v47, %v278_v7  ;;  %v298_v56 = vadd.f32 %v297_v49, %v296_v42 }
  0x34   :  { %v219_v55 = vcombine.low %v144_v38, %v150_v48  ;;  %v304_v57 = vadd.f32 %v303_v50, %v302_v21  ;;  %v326_v58 = vadd.f32 %v325_v51, %v279_v31  ;;  %v310_v61 = vadd.f32 %v309_v53, %v308_v44 }
  0x35   :  { %v293_v60 = vrot.slane %v292_v52, 1  ;;  %v315_v20 = vrot.slane %v314_v54, 2  ;;  %v321_v0 = vrot.slane %v320_v15, 2  ;;  %v299_v3 = vrot.slane %v298_v56, 1 }
  0x36   :  { %v247_v1 = vrot.slane %v219_v55, %v629_v8  ;;  %v305_v4 = vrot.slane %v304_v57, 1  ;;  %v327_v5 = vrot.slane %v326_v58, 2  ;;  %v311_v12 = vrot.slane %v310_v61, 1 }
  0x37   :  { %v294_v6 = vadd.f32 %v293_v60, %v292_v52  ;;  %v316_v14 = vadd.f32 %v315_v20, %v314_v54  ;;  %v322_v17 = vadd.f32 %v321_v0, %v320_v15  ;;  %v300_v19 = vadd.f32 %v299_v3, %v298_v56 }
  0x38   :  { %v249_v18 = vcombine.low %v240_v39, %v247_v1  ;;  %v306_v22 = vadd.f32 %v305_v4, %v304_v57  ;;  %v328_v23 = vadd.f32 %v327_v5, %v326_v58  ;;  %v312_v24 = vadd.f32 %v311_v12, %v310_v61 }
  0x39   :  { %v317_v25 = vrot.slane %v316_v14, 1  ;;  %v323_v27 = vrot.slane %v322_v17, 1  ;;  %v331_v29 = vrot.slane %v280_v34, 4  ;;  %v401_v31 = vcombine.low %v294_v6, %v300_v19 }
  0x3a   :  { %v263_v30 = vrot.slane %v249_v18, %v629_v8  ;;  %v329_v7 = vrot.slane %v328_v23, 1  ;;  %v402_v9 = vcombine.low %v306_v22, %v312_v24  ;;  %v281_v37 = vmul.f32 %v657_v62, %v657_v62 }
  0x3b   :  { %v318_v32 = vadd.f32 %v317_v25, %v316_v14  ;;  %v324_v33 = vadd.f32 %v323_v27, %v322_v17  ;;  %v332_v35 = vadd.f32 %v331_v29, %v280_v34  ;;  %v411_v10 = vrot.slane %v401_v31, %v629_v8 }
  0x3c   :  { %v264_v36 = vcombine.low %v714_v16, %v263_v30  ;;  %v282_v38 = vmul.f32 %v659_v63, %v659_v63  ;;  %v418_v40 = vrot.slane %v402_v9, %v629_v8  ;;  %v283_v34 = vmul.f32 %v661_v2, %v661_v2 }
  0x3d   :  { %v333_v39 = vrot.slane %v332_v35, 2  ;;  %v403_v11 = vcombine.low %v318_v32, %v324_v33  ;;  %v284_v41 = vmul.f32 %v665_v13, %v665_v13  ;;  %v285_v16 = vmul.f32 %v674_v26, %v674_v26 }
  0x3e   :  { %v286_v42 = vmul.f32 %v677_v28, %v677_v28  ;;  %v330_v62 = vadd.f32 %v329_v7, %v328_v23  ;;  %v287_v43 = vmul.f32 %v686_v45, %v686_v45  ;;  %270 = vst [vmem:[#allocation5 + $0x8] sm:$0xff] %v264_v36  ;;  %v433_v44 = vcombine.low %v411_v10, %v418_v40 }
  0x3f   :  { %v334_v21 = vadd.f32 %v333_v39, %v332_v35  ;;  %v425_v63 = vrot.slane %v403_v11, %v629_v8  ;;  %v337_v2 = vrot.slane %v281_v37, 4  ;;  %v343_v46 = vrot.slane %v282_v38, 4 }
  0x40   :  { %v349_v47 = vrot.slane %v283_v34, 4  ;;  %v288_v26 = vmul.f32 %v690_v59, %v690_v59  ;;  %v355_v48 = vrot.slane %v284_v41, 4  ;;  %v361_v49 = vrot.slane %v285_v16, 4 }
  0x41   :  { %v335_v13 = vrot.slane %v334_v21, 1 }
  0x42   :  { %570 = shalt.err (!%p567_p9)
}
  0x43   :  { %514 = dma.vmem_to_hbm [thread:$0]  %s512_s14, 256, %s755_s1, [#allocation4]   ;;  %v338_v28 = vadd.f32 %v337_v2, %v281_v37  ;;  %v344_v45 = vadd.f32 %v343_v46, %v282_v38  ;;  %v350_v50 = vadd.f32 %v349_v47, %v283_v34  ;;  %v367_v51 = vrot.slane %v286_v42, 4 }
  0x44   :  { %v336_v52 = vadd.f32 %v335_v13, %v334_v21  ;;  %v356_v53 = vadd.f32 %v355_v48, %v284_v41  ;;  %v362_v59 = vadd.f32 %v361_v49, %v285_v16  ;;  %v373_v54 = vrot.slane %v287_v43, 4  ;;  %s608_s1 = smov [#allocation6]  }
  0x45   :  { %v339_v15 = vrot.slane %v338_v28, 2  ;;  %v345_v55 = vrot.slane %v344_v45, 2  ;;  %v351_v56 = vrot.slane %v350_v50, 2  ;;  %v368_v57 = vadd.f32 %v367_v51, %v286_v42  ;;  %s521_s18 = sshll.u32 %s608_s1, 4  ;;  %s522_s18 = int_to_ptr.vmem [resolvable:$true] %s521_s18 }
  0x46   :  { %v404_v58 = vcombine.low %v330_v62, %v336_v52  ;;  %v357_v60 = vrot.slane %v356_v53, 2  ;;  %v363_v61 = vrot.slane %v362_v59, 2  ;;  %v374_v20 = vadd.f32 %v373_v54, %v287_v43  ;;  %s579_s19 = scalar_lea.vmem %s522_s18, 256  ;;  %p584_p11 = scmp.lt.s32.totalorder %s522_s18, %s522_s18 }
  0x47   :  { %v340_v0 = vadd.f32 %v339_v15, %v338_v28  ;;  %v346_v1 = vadd.f32 %v345_v55, %v344_v45  ;;  %v352_v3 = vadd.f32 %v351_v56, %v350_v50  ;;  %v369_v4 = vrot.slane %v368_v57, 2  ;;  %p580_p10 = scmp.ne.s32.totalorder %s522_s18, %s579_s19  ;;  %p585_p12 = scmp.lt.s32.totalorder %s579_s19, %s579_s19 }
  0x48   :  { %v432_v5 = vrot.slane %v404_v58, %v629_v8  ;;  %v358_v6 = vadd.f32 %v357_v60, %v356_v53  ;;  %v364_v12 = vadd.f32 %v363_v61, %v362_v59  ;;  %v375_v14 = vrot.slane %v374_v20, 2 }
  0x49   :  { %v341_v17 = vrot.slane %v340_v0, 1  ;;  %v347_v18 = vrot.slane %v346_v1, 1  ;;  %v353_v19 = vrot.slane %v352_v3, 1  ;;  %v370_v22 = vadd.f32 %v369_v4, %v368_v57  ;;  %p586_p13 = por %p585_p12, %p584_p11 }
  0x4a   :  { %v434_v23 = vcombine.low %v425_v63, %v432_v5  ;;  %v441_v24 = vrot.slane %v433_v44, %v629_v8  ;;  %v359_v25 = vrot.slane %v358_v6, 1  ;;  %v365_v27 = vrot.slane %v364_v12, 1 }
  0x4b   :  { %v342_v30 = vadd.f32 %v341_v17, %v340_v0  ;;  %v348_v7 = vadd.f32 %v347_v18, %v346_v1  ;;  %v376_v31 = vadd.f32 %v375_v14, %v374_v20  ;;  %v354_v32 = vadd.f32 %v353_v19, %v352_v3  ;;  %p587_p0 = pnand %p586_p13, %p580_p10 }
  0x4c   :  { %v448_v29 = vrot.slane %v434_v23, %v629_v8  ;;  %v360_v33 = vadd.f32 %v359_v25, %v358_v6  ;;  %v371_v35 = vrot.slane %v370_v22, 1  ;;  %v379_v9 = vrot.slane %v288_v26, 4 }
  0x4d   :  { %v366_v37 = vadd.f32 %v365_v27, %v364_v12  ;;  %v377_v38 = vrot.slane %v376_v31, 1  ;;  %v450_v40 = vcombine.low %v342_v30, %v348_v7 }
  0x4e   :  { %v449_v36 = vcombine.low %v441_v24, %v448_v29  ;;  %v380_v10 = vadd.f32 %v379_v9, %v288_v26  ;;  %v372_v39 = vadd.f32 %v371_v35, %v370_v22  ;;  %v451_v34 = vcombine.low %v354_v32, %v360_v33 }
  0x4f   :  { %v378_v16 = vadd.f32 %v377_v38, %v376_v31  ;;  %v460_v21 = vrot.slane %v450_v40, %v629_v8 }
  0x50   :  { %v381_v11 = vrot.slane %v380_v10, 2  ;;  %503 = vst [vmem:[#allocation6] sm:$0xff] %v449_v36  ;;  %v452_v62 = vcombine.low %v366_v37, %v372_v39  ;;  %v467_v63 = vrot.slane %v451_v34, %v629_v8 }
  0x52   :  { %v382_v41 = vadd.f32 %v381_v11, %v380_v10  ;;  %v474_v2 = vrot.slane %v452_v62, %v629_v8  ;;  %v482_v46 = vcombine.low %v460_v21, %v467_v63 }
  0x54   :  { %v383_v42 = vrot.slane %v382_v41, 1  ;;  %v490_v26 = vrot.slane %v482_v46, %v629_v8 }
  0x56   :  { %v384_v43 = vadd.f32 %v383_v42, %v382_v41 }
  0x58   :  { %v453_v44 = vcombine.low %v378_v16, %v384_v43 }
  0x5a   :  { %v481_v47 = vrot.slane %v453_v44, %v629_v8 }
  0x5c   :  { %v483_v13 = vcombine.low %v474_v2, %v481_v47 }
  0x5e   :  { %v497_v48 = vrot.slane %v483_v13, %v629_v8 }
  0x60   :  { %v498_v49 = vcombine.low %v490_v26, %v497_v48 }
  0x62   :  { %504 = vst [vmem:[#allocation6 + $0x8] sm:$0xff] %v498_v49 }
  0x63   :  { %590 = shalt.err (!%p587_p0)
}
  0x64   :  { %524 = dma.vmem_to_hbm [thread:$0]  %s522_s18, 256, %s756_s2, [#allocation7]  }
  0x65   :  { %601 = dma.done.wait [#allocation4], 256  }
  0x66   :  { %602 = vsyncadd [#allocation4], 4294967040 }
  0x67   :  { %603 = dma.done.wait [#allocation7], 256  }
  0x68   :  { %604 = vsyncadd [#allocation7], 4294967040 }
  0x69   :  { %531 = vsyncpa [#allocation3], 1 }
  0x6a   :  { %532 = vsyncpa [#allocation4], 1 }
  0x6b   :  { %533 = vsyncpa [#allocation7], 1 }

</bundles_post_ra>
